<compile_context>
chip_gen: v7x
topology: tpu7x:2x2x1
jax: 0.10.0
libtpu: 0.0.40
codegen_flags: <defaults>
</compile_context>

<pallas_src>
import math

import jax
import jax.numpy as jnp
from jax import lax
from jax.experimental import pallas as pl
from jax.experimental.pallas import tpu as pltpu

# ---------------- config (small, deterministic) ----------------
B = 2            # batch
T = 8            # sequence length
D = 32           # n_embd (real width)
UP = 4           # mlp_upfactor
H = UP * D       # MLP hidden = 128 (already lane-dense)
N_LAYER = 2
BLOCK_SIZE = 16  # config.block_size (>= T)
LN_EPS = 1e-5
D_PAD = 128      # lane-dense padded embedding width; real data lives in [:, :D]
N_ROWS = B * T   # 16 rows, processed in a single tile (no grid)

# row layout of the packed f32 vector-parameter tensor (vec_params)
ROW_WPE = 0                                   # rows [0, BLOCK_SIZE): wpe table
ROWS_PER_LAYER = 6                            # ln1_w, ln1_b, ln2_w, ln2_b, b_fc, b_proj
ROW_BLOCKS = BLOCK_SIZE                       # per-layer rows start here
ROW_LNF = BLOCK_SIZE + ROWS_PER_LAYER * N_LAYER   # lnf_w, lnf_b
N_VEC_ROWS = ROW_LNF + 2


# ---------------- fused kernel ----------------
def _layernorm_padded(x, w, b, mask):
    # x: (N, D_PAD) with zeros in padded lanes. Stats are taken over the real D lanes.
    mu = jnp.sum(x, axis=-1, keepdims=True) * (1.0 / D)
    xc = (x - mu) * mask                              # re-zero padded lanes exactly
    var = jnp.sum(xc * xc, axis=-1, keepdims=True) * (1.0 / D)
    # w, b are zero in padded lanes -> padded lanes of the output stay exactly 0.
    return xc * lax.rsqrt(var + LN_EPS) * w + b


def _gelu_exact(x):
    # PyTorch nn.GELU() default: 0.5 * x * (1 + erf(x / sqrt(2)))
    return 0.5 * x * (1.0 + lax.erf(x * (1.0 / math.sqrt(2.0))))


def _gpt2_fused_kernel(tok_ref, vec_ref, wfc_ref, wproj_ref, o_ref):
    # lane mask for the real (unpadded) embedding columns, hoisted once
    mask = (lax.broadcasted_iota(jnp.int32, (1, D_PAD), 1) < D).astype(jnp.float32)

    # lane-pad the token embeddings (N, D) -> (N, D_PAD) in-kernel; padded lanes == 0
    tok = tok_ref[...].astype(jnp.float32)
    x = jnp.concatenate(
        [tok, jnp.zeros((N_ROWS, D_PAD - D), jnp.float32)], axis=-1)

    # positional-embedding broadcast-add fused in (dropout p=0 -> identity).
    # Rows are batch-major, so row r has position r % T; wpe is already zero-padded.
    pos = vec_ref[ROW_WPE:ROW_WPE + T, :]                 # (T, D_PAD), VMEM-resident
    x = x + jnp.concatenate([pos] * B, axis=0)            # (N_ROWS, D_PAD)

    # Static layer loop; all stacked weights stay resident in VMEM for the whole call.
    # TODO(synk): at real GPT-2 sizes (esp. v7x, 64 MiB VMEM) switch to a grid=(N_LAYER,)
    # "arbitrary" axis with per-layer BlockSpecs on the stacked weights (auto
    # double-buffered layer streaming) and a persistent VMEM scratch for the activation.
    for l in range(N_LAYER):
        base = ROW_BLOCKS + ROWS_PER_LAYER * l
        ln1_w = vec_ref[base + 0:base + 1, :]
        ln1_b = vec_ref[base + 1:base + 2, :]
        ln2_w = vec_ref[base + 2:base + 3, :]
        ln2_b = vec_ref[base + 3:base + 4, :]
        b_fc = vec_ref[base + 4:base + 5, :]              # (1, H) -- H == 128
        b_pr = vec_ref[base + 5:base + 6, :]              # (1, D_PAD), zero-padded

        # seq-mixer = Identity with residual: x = x + ln_1(x)
        h = x + _layernorm_padded(x, ln1_w, ln1_b, mask)

        # MLP branch with residual: h + c_proj(gelu(c_fc(ln_2(h))))
        y = _layernorm_padded(h, ln2w := ln2_w, ln2_b, mask)
        # c_fc contracts over the real D lanes only (w_fc stored unpadded, bf16)
        z = jnp.dot(y[:, :D].astype(jnp.bfloat16), wfc_ref[l],
                    preferred_element_type=jnp.float32) + b_fc
        z = _gelu_exact(z)
        m = jnp.dot(z.astype(jnp.bfloat16), wproj_ref[l],
                    preferred_element_type=jnp.float32) + b_pr
        x = h + m                                          # padded lanes remain exactly 0

    # final LayerNorm, lane-dense (128-wide) store
    lnf_w = vec_ref[ROW_LNF:ROW_LNF + 1, :]
    lnf_b = vec_ref[ROW_LNF + 1:ROW_LNF + 2, :]
    o_ref[...] = _layernorm_padded(x, lnf_w, lnf_b, mask).astype(o_ref.dtype)


# ---------------- wrapper ----------------
@jax.jit
def gpt2_forward(tok_emb, packed):
    b, t, d = tok_emb.shape
    assert b == B and t == T and d == D, "shapes are compile-time constants of the kernel"
    n = b * t
    tok = tok_emb.reshape(n, d)          # contiguous reshape -> free (no pad here)

    vmem = pl.BlockSpec(memory_space=pltpu.MemorySpace.VMEM)
    out = pl.pallas_call(
        _gpt2_fused_kernel,
        out_shape=jax.ShapeDtypeStruct((n, D_PAD), jnp.float32),
        in_specs=[vmem] * 4,
        out_specs=vmem,
        # No grid: single TC, single step. If B*T ever grows past ~128 rows, add a
        # leading row-tile grid axis marked "parallel" (v7x has 2 TCs).
    )(tok, packed["vec"], packed["w_fc"], packed["w_proj"])

    # consumer-side de-pad back to the module's (b, t, d) output
    return out[:, :D].reshape(b, t, d)


# ---------------- parameter init (deterministic, mirrors _init_weights) ----------------
def init_params(key):
    p = {"blocks": []}
    key, k_wpe = jax.random.split(key)
    p["wpe"] = 0.02 * jax.random.normal(k_wpe, (BLOCK_SIZE, D), jnp.float32)
    cproj_std = 0.02 / math.sqrt(2 * N_LAYER)
    for _ in range(N_LAYER):
        key, k_fc, k_proj = jax.random.split(key, 3)
        p["blocks"].append({
            "ln1_w": jnp.ones((D,), jnp.float32),
            "ln1_b": jnp.zeros((D,), jnp.float32),
            "ln2_w": jnp.ones((D,), jnp.float32),
            "ln2_b": jnp.zeros((D,), jnp.float32),
            "w_fc": 0.02 * jax.random.normal(k_fc, (D, H), jnp.float32),
            "b_fc": jnp.zeros((H,), jnp.float32),
            "w_proj": cproj_std * jax.random.normal(k_proj, (H, D), jnp.float32),
            "b_proj": jnp.zeros((D,), jnp.float32),
        })
    p["lnf_w"] = jnp.ones((D,), jnp.float32)
    p["lnf_b"] = jnp.zeros((D,), jnp.float32)
    return p


def pack_params(p):
    """Pack all parameters into 3 kernel inputs:
      vec    : (N_VEC_ROWS, D_PAD) f32 -- wpe rows, per-layer [ln1_w, ln1_b, ln2_w,
               ln2_b, b_fc, b_proj], then [lnf_w, lnf_b]; D-wide vectors zero-padded
               to D_PAD (the zero padded-lane invariant is required by the kernel).
      w_fc   : (L, D, H)       bf16 -- contraction dim kept un-padded (no zero DMA).
      w_proj : (L, H, D_PAD)   bf16 -- output dim zero-padded (lane-dense residual)."""
    def pad_vec(a):
        return jnp.pad(a, (0, D_PAD - D))

    rows = [jnp.pad(p["wpe"], ((0, 0), (0, D_PAD - D)))]          # (BLOCK_SIZE, D_PAD)
    for blk in p["blocks"]:
        rows.append(jnp.stack([
            pad_vec(blk["ln1_w"]), pad_vec(blk["ln1_b"]),
            pad_vec(blk["ln2_w"]), pad_vec(blk["ln2_b"]),
            blk["b_fc"],                                           # (H,) == (D_PAD,)
            pad_vec(blk["b_proj"]),
        ], axis=0))                                                # (6, D_PAD)
    rows.append(jnp.stack([pad_vec(p["lnf_w"]), pad_vec(p["lnf_b"])], axis=0))
    vec = jnp.concatenate(rows, axis=0)
    assert vec.shape == (N_VEC_ROWS, D_PAD)

    w_fc = jnp.stack([blk["w_fc"] for blk in p["blocks"]], axis=0).astype(jnp.bfloat16)
    w_proj = jnp.stack(
        [jnp.pad(blk["w_proj"], ((0, 0), (0, D_PAD - D))) for blk in p["blocks"]],
        axis=0).astype(jnp.bfloat16)
    return {"vec": vec, "w_fc": w_fc, "w_proj": w_proj}


# ---------------- reference (plain JAX, f32) for sanity ----------------
def _ref_forward(tok_emb, params):
    def ln(x, w, b):
        mu = x.mean(-1, keepdims=True)
        var = ((x - mu) ** 2).mean(-1, keepdims=True)
        return (x - mu) / jnp.sqrt(var + LN_EPS) * w + b

    x = tok_emb + params["wpe"][: tok_emb.shape[1]][None]
    for p in params["blocks"]:
        x = x + ln(x, p["ln1_w"], p["ln1_b"])
        y = ln(x, p["ln2_w"], p["ln2_b"])
        z = y @ p["w_fc"] + p["b_fc"]
        z = 0.5 * z * (1.0 + lax.erf(z / math.sqrt(2.0)))
        x = x + (z @ p["w_proj"] + p["b_proj"])
    return ln(x, params["lnf_w"], params["lnf_b"])


if __name__ == "__main__":
    key = jax.random.PRNGKey(0)
    k_params, k_x = jax.random.split(key)
    params = init_params(k_params)
    packed = pack_params(params)
    tok_emb = 0.02 * jax.random.normal(k_x, (B, T, D), jnp.float32)

    out = gpt2_forward(tok_emb, packed)
    out = jax.block_until_ready(out)

    ref = _ref_forward(tok_emb, params)
    assert out.shape == (B, T, D)
    # tolerance loosened vs. pure-f32: matmul weights/LHS are bf16 on the MXU (per review)
    assert jnp.allclose(out, ref, atol=1e-2, rtol=1e-2), "mismatch vs JAX reference"
    print("KERNEL_OK")
</pallas_src>

<mosaic_0001>
module attributes {stable_mosaic.version = 11 : i64} {
  func.func @_gpt2_fused_kernel(%arg0: memref<16x32xf32, #tpu.memory_space<vmem>>, %arg1: memref<30x128xf32, #tpu.memory_space<vmem>>, %arg2: memref<2x32x128xbf16, #tpu.memory_space<vmem>>, %arg3: memref<2x128x128xbf16, #tpu.memory_space<vmem>>, %arg4: memref<16x128xf32, #tpu.memory_space<vmem>>) attributes {dimension_semantics = [], scalar_prefetch = 0 : i64, scratch_operands = 0 : i64, tpu.core_type = #tpu.core_type<tc>} {
    %0 = tpu.iota {dimensions = array<i32: 1>} : vector<1x128xi32>
    %c32_i32 = arith.constant 32 : i32
    %1 = vector.broadcast %c32_i32 : i32 to vector<1x128xi32>
    %2 = arith.cmpi slt, %0, %1 : vector<1x128xi32>
    %3 = arith.extui %2 : vector<1x128xi1> to vector<1x128xi32>
    %4 = arith.sitofp %3 : vector<1x128xi32> to vector<1x128xf32>
    %c0 = arith.constant 0 : index
    %c0_0 = arith.constant 0 : index
    %5 = vector.load %arg0[%c0, %c0_0] : memref<16x32xf32, #tpu.memory_space<vmem>>, vector<16x32xf32>
    %cst = arith.constant 0.000000e+00 : f32
    %6 = vector.broadcast %cst : f32 to vector<16x96xf32>
    %7 = tpu.concatenate %5, %6 in 1 : vector<16x32xf32>, vector<16x96xf32> -> vector<16x128xf32>
    %c0_1 = arith.constant 0 : index
    %c0_2 = arith.constant 0 : index
    %8 = vector.load %arg1[%c0_1, %c0_2] : memref<30x128xf32, #tpu.memory_space<vmem>>, vector<8x128xf32>
    %9 = tpu.concatenate %8, %8 in 0 : vector<8x128xf32>, vector<8x128xf32> -> vector<16x128xf32>
    %10 = arith.addf %7, %9 : vector<16x128xf32>
    %c16 = arith.constant 16 : index
    %c0_3 = arith.constant 0 : index
    %11 = vector.load %arg1[%c16, %c0_3] : memref<30x128xf32, #tpu.memory_space<vmem>>, vector<1x128xf32>
    %c17 = arith.constant 17 : index
    %c0_4 = arith.constant 0 : index
    %12 = vector.load %arg1[%c17, %c0_4] : memref<30x128xf32, #tpu.memory_space<vmem>>, vector<1x128xf32>
    %c18 = arith.constant 18 : index
    %c0_5 = arith.constant 0 : index
    %13 = vector.load %arg1[%c18, %c0_5] : memref<30x128xf32, #tpu.memory_space<vmem>>, vector<1x128xf32>
    %c19 = arith.constant 19 : index
    %c0_6 = arith.constant 0 : index
    %14 = vector.load %arg1[%c19, %c0_6] : memref<30x128xf32, #tpu.memory_space<vmem>>, vector<1x128xf32>
    %c20 = arith.constant 20 : index
    %c0_7 = arith.constant 0 : index
    %15 = vector.load %arg1[%c20, %c0_7] : memref<30x128xf32, #tpu.memory_space<vmem>>, vector<1x128xf32>
    %c21 = arith.constant 21 : index
    %c0_8 = arith.constant 0 : index
    %16 = vector.load %arg1[%c21, %c0_8] : memref<30x128xf32, #tpu.memory_space<vmem>>, vector<1x128xf32>
    %cst_9 = arith.constant dense<0.000000e+00> : vector<16xf32>
    %17 = vector.multi_reduction <add>, %10, %cst_9 [1] : vector<16x128xf32> to vector<16xf32>
    %18 = vector.shape_cast %17 : vector<16xf32> to vector<16x1xf32>
    %cst_10 = arith.constant 3.125000e-02 : f32
    %19 = vector.broadcast %cst_10 : f32 to vector<16x1xf32>
    %20 = arith.mulf %18, %19 : vector<16x1xf32>
    %21 = vector.broadcast %20 : vector<16x1xf32> to vector<16x128xf32>
    %22 = arith.subf %10, %21 : vector<16x128xf32>
    %23 = vector.broadcast %4 : vector<1x128xf32> to vector<16x128xf32>
    %24 = arith.mulf %22, %23 : vector<16x128xf32>
    %25 = arith.mulf %24, %24 : vector<16x128xf32>
    %cst_11 = arith.constant dense<0.000000e+00> : vector<16xf32>
    %26 = vector.multi_reduction <add>, %25, %cst_11 [1] : vector<16x128xf32> to vector<16xf32>
    %27 = vector.shape_cast %26 : vector<16xf32> to vector<16x1xf32>
    %cst_12 = arith.constant 3.125000e-02 : f32
    %28 = vector.broadcast %cst_12 : f32 to vector<16x1xf32>
    %29 = arith.mulf %27, %28 : vector<16x1xf32>
    %cst_13 = arith.constant 9.99999974E-6 : f32
    %30 = vector.broadcast %cst_13 : f32 to vector<16x1xf32>
    %31 = arith.addf %29, %30 : vector<16x1xf32>
    %32 = math.rsqrt %31 : vector<16x1xf32>
    %33 = vector.broadcast %32 : vector<16x1xf32> to vector<16x128xf32>
    %34 = arith.mulf %24, %33 : vector<16x128xf32>
    %35 = vector.broadcast %11 : vector<1x128xf32> to vector<16x128xf32>
    %36 = arith.mulf %34, %35 : vector<16x128xf32>
    %37 = vector.broadcast %12 : vector<1x128xf32> to vector<16x128xf32>
    %38 = arith.addf %36, %37 : vector<16x128xf32>
    %39 = arith.addf %10, %38 : vector<16x128xf32>
    %cst_14 = arith.constant dense<0.000000e+00> : vector<16xf32>
    %40 = vector.multi_reduction <add>, %39, %cst_14 [1] : vector<16x128xf32> to vector<16xf32>
    %41 = vector.shape_cast %40 : vector<16xf32> to vector<16x1xf32>
    %cst_15 = arith.constant 3.125000e-02 : f32
    %42 = vector.broadcast %cst_15 : f32 to vector<16x1xf32>
    %43 = arith.mulf %41, %42 : vector<16x1xf32>
    %44 = vector.broadcast %43 : vector<16x1xf32> to vector<16x128xf32>
    %45 = arith.subf %39, %44 : vector<16x128xf32>
    %46 = vector.broadcast %4 : vector<1x128xf32> to vector<16x128xf32>
    %47 = arith.mulf %45, %46 : vector<16x128xf32>
    %48 = arith.mulf %47, %47 : vector<16x128xf32>
    %cst_16 = arith.constant dense<0.000000e+00> : vector<16xf32>
    %49 = vector.multi_reduction <add>, %48, %cst_16 [1] : vector<16x128xf32> to vector<16xf32>
    %50 = vector.shape_cast %49 : vector<16xf32> to vector<16x1xf32>
    %cst_17 = arith.constant 3.125000e-02 : f32
    %51 = vector.broadcast %cst_17 : f32 to vector<16x1xf32>
    %52 = arith.mulf %50, %51 : vector<16x1xf32>
    %cst_18 = arith.constant 9.99999974E-6 : f32
    %53 = vector.broadcast %cst_18 : f32 to vector<16x1xf32>
    %54 = arith.addf %52, %53 : vector<16x1xf32>
    %55 = math.rsqrt %54 : vector<16x1xf32>
    %56 = vector.broadcast %55 : vector<16x1xf32> to vector<16x128xf32>
    %57 = arith.mulf %47, %56 : vector<16x128xf32>
    %58 = vector.broadcast %13 : vector<1x128xf32> to vector<16x128xf32>
    %59 = arith.mulf %57, %58 : vector<16x128xf32>
    %60 = vector.broadcast %14 : vector<1x128xf32> to vector<16x128xf32>
    %61 = arith.addf %59, %60 : vector<16x128xf32>
    %62 = vector.extract_strided_slice %61 {offsets = [0, 0], sizes = [16, 32], strides = [1, 1]} : vector<16x128xf32> to vector<16x32xf32>
    %63 = arith.truncf %62 : vector<16x32xf32> to vector<16x32xbf16>
    %c0_19 = arith.constant 0 : index
    %c0_20 = arith.constant 0 : index
    %c0_21 = arith.constant 0 : index
    %64 = vector.load %arg2[%c0_19, %c0_20, %c0_21] : memref<2x32x128xbf16, #tpu.memory_space<vmem>>, vector<1x32x128xbf16>
    %65 = vector.shape_cast %64 : vector<1x32x128xbf16> to vector<32x128xbf16>
    %cst_22 = arith.constant dense<0.000000e+00> : vector<16x128xf32>
    %66 = tpu.matmul %63, %65, %cst_22 {dimension_numbers = #tpu.dot_dimension_numbers<[1], [0], [0], [1], [0, 0, 1, 1], [], []>} : vector<16x32xbf16>, vector<32x128xbf16>, vector<16x128xf32> -> vector<16x128xf32>
    %67 = vector.broadcast %15 : vector<1x128xf32> to vector<16x128xf32>
    %68 = arith.addf %66, %67 : vector<16x128xf32>
    %cst_23 = arith.constant 5.000000e-01 : f32
    %69 = vector.broadcast %cst_23 : f32 to vector<16x128xf32>
    %70 = arith.mulf %69, %68 : vector<16x128xf32>
    %cst_24 = arith.constant 0.707106769 : f32
    %71 = vector.broadcast %cst_24 : f32 to vector<16x128xf32>
    %72 = arith.mulf %68, %71 : vector<16x128xf32>
    %73 = math.erf %72 : vector<16x128xf32>
    %cst_25 = arith.constant 1.000000e+00 : f32
    %74 = vector.broadcast %cst_25 : f32 to vector<16x128xf32>
    %75 = arith.addf %74, %73 : vector<16x128xf32>
    %76 = arith.mulf %70, %75 : vector<16x128xf32>
    %77 = arith.truncf %76 : vector<16x128xf32> to vector<16x128xbf16>
    %c0_26 = arith.constant 0 : index
    %c0_27 = arith.constant 0 : index
    %c0_28 = arith.constant 0 : index
    %78 = vector.load %arg3[%c0_26, %c0_27, %c0_28] : memref<2x128x128xbf16, #tpu.memory_space<vmem>>, vector<1x128x128xbf16>
    %79 = vector.shape_cast %78 : vector<1x128x128xbf16> to vector<128x128xbf16>
    %cst_29 = arith.constant dense<0.000000e+00> : vector<16x128xf32>
    %80 = tpu.matmul %77, %79, %cst_29 {dimension_numbers = #tpu.dot_dimension_numbers<[1], [0], [0], [1], [0, 0, 1, 1], [], []>} : vector<16x128xbf16>, vector<128x128xbf16>, vector<16x128xf32> -> vector<16x128xf32>
    %81 = vector.broadcast %16 : vector<1x128xf32> to vector<16x128xf32>
    %82 = arith.addf %80, %81 : vector<16x128xf32>
    %83 = arith.addf %39, %82 : vector<16x128xf32>
    %c22 = arith.constant 22 : index
    %c0_30 = arith.constant 0 : index
    %84 = vector.load %arg1[%c22, %c0_30] : memref<30x128xf32, #tpu.memory_space<vmem>>, vector<1x128xf32>
    %c23 = arith.constant 23 : index
    %c0_31 = arith.constant 0 : index
    %85 = vector.load %arg1[%c23, %c0_31] : memref<30x128xf32, #tpu.memory_space<vmem>>, vector<1x128xf32>
    %c24 = arith.constant 24 : index
    %c0_32 = arith.constant 0 : index
    %86 = vector.load %arg1[%c24, %c0_32] : memref<30x128xf32, #tpu.memory_space<vmem>>, vector<1x128xf32>
    %c25 = arith.constant 25 : index
    %c0_33 = arith.constant 0 : index
    %87 = vector.load %arg1[%c25, %c0_33] : memref<30x128xf32, #tpu.memory_space<vmem>>, vector<1x128xf32>
    %c26 = arith.constant 26 : index
    %c0_34 = arith.constant 0 : index
    %88 = vector.load %arg1[%c26, %c0_34] : memref<30x128xf32, #tpu.memory_space<vmem>>, vector<1x128xf32>
    %c27 = arith.constant 27 : index
    %c0_35 = arith.constant 0 : index
    %89 = vector.load %arg1[%c27, %c0_35] : memref<30x128xf32, #tpu.memory_space<vmem>>, vector<1x128xf32>
    %cst_36 = arith.constant dense<0.000000e+00> : vector<16xf32>
    %90 = vector.multi_reduction <add>, %83, %cst_36 [1] : vector<16x128xf32> to vector<16xf32>
    %91 = vector.shape_cast %90 : vector<16xf32> to vector<16x1xf32>
    %cst_37 = arith.constant 3.125000e-02 : f32
    %92 = vector.broadcast %cst_37 : f32 to vector<16x1xf32>
    %93 = arith.mulf %91, %92 : vector<16x1xf32>
    %94 = vector.broadcast %93 : vector<16x1xf32> to vector<16x128xf32>
    %95 = arith.subf %83, %94 : vector<16x128xf32>
    %96 = vector.broadcast %4 : vector<1x128xf32> to vector<16x128xf32>
    %97 = arith.mulf %95, %96 : vector<16x128xf32>
    %98 = arith.mulf %97, %97 : vector<16x128xf32>
    %cst_38 = arith.constant dense<0.000000e+00> : vector<16xf32>
    %99 = vector.multi_reduction <add>, %98, %cst_38 [1] : vector<16x128xf32> to vector<16xf32>
    %100 = vector.shape_cast %99 : vector<16xf32> to vector<16x1xf32>
    %cst_39 = arith.constant 3.125000e-02 : f32
    %101 = vector.broadcast %cst_39 : f32 to vector<16x1xf32>
    %102 = arith.mulf %100, %101 : vector<16x1xf32>
    %cst_40 = arith.constant 9.99999974E-6 : f32
    %103 = vector.broadcast %cst_40 : f32 to vector<16x1xf32>
    %104 = arith.addf %102, %103 : vector<16x1xf32>
    %105 = math.rsqrt %104 : vector<16x1xf32>
    %106 = vector.broadcast %105 : vector<16x1xf32> to vector<16x128xf32>
    %107 = arith.mulf %97, %106 : vector<16x128xf32>
    %108 = vector.broadcast %84 : vector<1x128xf32> to vector<16x128xf32>
    %109 = arith.mulf %107, %108 : vector<16x128xf32>
    %110 = vector.broadcast %85 : vector<1x128xf32> to vector<16x128xf32>
    %111 = arith.addf %109, %110 : vector<16x128xf32>
    %112 = arith.addf %83, %111 : vector<16x128xf32>
    %cst_41 = arith.constant dense<0.000000e+00> : vector<16xf32>
    %113 = vector.multi_reduction <add>, %112, %cst_41 [1] : vector<16x128xf32> to vector<16xf32>
    %114 = vector.shape_cast %113 : vector<16xf32> to vector<16x1xf32>
    %cst_42 = arith.constant 3.125000e-02 : f32
    %115 = vector.broadcast %cst_42 : f32 to vector<16x1xf32>
    %116 = arith.mulf %114, %115 : vector<16x1xf32>
    %117 = vector.broadcast %116 : vector<16x1xf32> to vector<16x128xf32>
    %118 = arith.subf %112, %117 : vector<16x128xf32>
    %119 = vector.broadcast %4 : vector<1x128xf32> to vector<16x128xf32>
    %120 = arith.mulf %118, %119 : vector<16x128xf32>
    %121 = arith.mulf %120, %120 : vector<16x128xf32>
    %cst_43 = arith.constant dense<0.000000e+00> : vector<16xf32>
    %122 = vector.multi_reduction <add>, %121, %cst_43 [1] : vector<16x128xf32> to vector<16xf32>
    %123 = vector.shape_cast %122 : vector<16xf32> to vector<16x1xf32>
    %cst_44 = arith.constant 3.125000e-02 : f32
    %124 = vector.broadcast %cst_44 : f32 to vector<16x1xf32>
    %125 = arith.mulf %123, %124 : vector<16x1xf32>
    %cst_45 = arith.constant 9.99999974E-6 : f32
    %126 = vector.broadcast %cst_45 : f32 to vector<16x1xf32>
    %127 = arith.addf %125, %126 : vector<16x1xf32>
    %128 = math.rsqrt %127 : vector<16x1xf32>
    %129 = vector.broadcast %128 : vector<16x1xf32> to vector<16x128xf32>
    %130 = arith.mulf %120, %129 : vector<16x128xf32>
    %131 = vector.broadcast %86 : vector<1x128xf32> to vector<16x128xf32>
    %132 = arith.mulf %130, %131 : vector<16x128xf32>
    %133 = vector.broadcast %87 : vector<1x128xf32> to vector<16x128xf32>
    %134 = arith.addf %132, %133 : vector<16x128xf32>
    %135 = vector.extract_strided_slice %134 {offsets = [0, 0], sizes = [16, 32], strides = [1, 1]} : vector<16x128xf32> to vector<16x32xf32>
    %136 = arith.truncf %135 : vector<16x32xf32> to vector<16x32xbf16>
    %c1 = arith.constant 1 : index
    %c0_46 = arith.constant 0 : index
    %c0_47 = arith.constant 0 : index
    %137 = vector.load %arg2[%c1, %c0_46, %c0_47] : memref<2x32x128xbf16, #tpu.memory_space<vmem>>, vector<1x32x128xbf16>
    %138 = vector.shape_cast %137 : vector<1x32x128xbf16> to vector<32x128xbf16>
    %cst_48 = arith.constant dense<0.000000e+00> : vector<16x128xf32>
    %139 = tpu.matmul %136, %138, %cst_48 {dimension_numbers = #tpu.dot_dimension_numbers<[1], [0], [0], [1], [0, 0, 1, 1], [], []>} : vector<16x32xbf16>, vector<32x128xbf16>, vector<16x128xf32> -> vector<16x128xf32>
    %140 = vector.broadcast %88 : vector<1x128xf32> to vector<16x128xf32>
    %141 = arith.addf %139, %140 : vector<16x128xf32>
    %cst_49 = arith.constant 5.000000e-01 : f32
    %142 = vector.broadcast %cst_49 : f32 to vector<16x128xf32>
    %143 = arith.mulf %142, %141 : vector<16x128xf32>
    %cst_50 = arith.constant 0.707106769 : f32
    %144 = vector.broadcast %cst_50 : f32 to vector<16x128xf32>
    %145 = arith.mulf %141, %144 : vector<16x128xf32>
    %146 = math.erf %145 : vector<16x128xf32>
    %cst_51 = arith.constant 1.000000e+00 : f32
    %147 = vector.broadcast %cst_51 : f32 to vector<16x128xf32>
    %148 = arith.addf %147, %146 : vector<16x128xf32>
    %149 = arith.mulf %143, %148 : vector<16x128xf32>
    %150 = arith.truncf %149 : vector<16x128xf32> to vector<16x128xbf16>
    %c1_52 = arith.constant 1 : index
    %c0_53 = arith.constant 0 : index
    %c0_54 = arith.constant 0 : index
    %151 = vector.load %arg3[%c1_52, %c0_53, %c0_54] : memref<2x128x128xbf16, #tpu.memory_space<vmem>>, vector<1x128x128xbf16>
    %152 = vector.shape_cast %151 : vector<1x128x128xbf16> to vector<128x128xbf16>
    %cst_55 = arith.constant dense<0.000000e+00> : vector<16x128xf32>
    %153 = tpu.matmul %150, %152, %cst_55 {dimension_numbers = #tpu.dot_dimension_numbers<[1], [0], [0], [1], [0, 0, 1, 1], [], []>} : vector<16x128xbf16>, vector<128x128xbf16>, vector<16x128xf32> -> vector<16x128xf32>
    %154 = vector.broadcast %89 : vector<1x128xf32> to vector<16x128xf32>
    %155 = arith.addf %153, %154 : vector<16x128xf32>
    %156 = arith.addf %112, %155 : vector<16x128xf32>
    %c28 = arith.constant 28 : index
    %c0_56 = arith.constant 0 : index
    %157 = vector.load %arg1[%c28, %c0_56] : memref<30x128xf32, #tpu.memory_space<vmem>>, vector<1x128xf32>
    %c29 = arith.constant 29 : index
    %c0_57 = arith.constant 0 : index
    %158 = vector.load %arg1[%c29, %c0_57] : memref<30x128xf32, #tpu.memory_space<vmem>>, vector<1x128xf32>
    %cst_58 = arith.constant dense<0.000000e+00> : vector<16xf32>
    %159 = vector.multi_reduction <add>, %156, %cst_58 [1] : vector<16x128xf32> to vector<16xf32>
    %160 = vector.shape_cast %159 : vector<16xf32> to vector<16x1xf32>
    %cst_59 = arith.constant 3.125000e-02 : f32
    %161 = vector.broadcast %cst_59 : f32 to vector<16x1xf32>
    %162 = arith.mulf %160, %161 : vector<16x1xf32>
    %163 = vector.broadcast %162 : vector<16x1xf32> to vector<16x128xf32>
    %164 = arith.subf %156, %163 : vector<16x128xf32>
    %165 = vector.broadcast %4 : vector<1x128xf32> to vector<16x128xf32>
    %166 = arith.mulf %164, %165 : vector<16x128xf32>
    %167 = arith.mulf %166, %166 : vector<16x128xf32>
    %cst_60 = arith.constant dense<0.000000e+00> : vector<16xf32>
    %168 = vector.multi_reduction <add>, %167, %cst_60 [1] : vector<16x128xf32> to vector<16xf32>
    %169 = vector.shape_cast %168 : vector<16xf32> to vector<16x1xf32>
    %cst_61 = arith.constant 3.125000e-02 : f32
    %170 = vector.broadcast %cst_61 : f32 to vector<16x1xf32>
    %171 = arith.mulf %169, %170 : vector<16x1xf32>
    %cst_62 = arith.constant 9.99999974E-6 : f32
    %172 = vector.broadcast %cst_62 : f32 to vector<16x1xf32>
    %173 = arith.addf %171, %172 : vector<16x1xf32>
    %174 = math.rsqrt %173 : vector<16x1xf32>
    %175 = vector.broadcast %174 : vector<16x1xf32> to vector<16x128xf32>
    %176 = arith.mulf %166, %175 : vector<16x128xf32>
    %177 = vector.broadcast %157 : vector<1x128xf32> to vector<16x128xf32>
    %178 = arith.mulf %176, %177 : vector<16x128xf32>
    %179 = vector.broadcast %158 : vector<1x128xf32> to vector<16x128xf32>
    %180 = arith.addf %178, %179 : vector<16x128xf32>
    %c0_63 = arith.constant 0 : index
    %c0_64 = arith.constant 0 : index
    %181 = vector.load %arg4[%c0_63, %c0_64] : memref<16x128xf32, #tpu.memory_space<vmem>>, vector<16x128xf32>
    tpu.vector_store %arg4[%c0_63, %c0_64], %180 {strides = array<i32>} : memref<16x128xf32, #tpu.memory_space<vmem>>, vector<16x128xf32>,
    return
  }
}

</mosaic_0001>

<bundles_post_ra>
// kernel: gpt2_forward.1
= control target key start
LH: loop header
LB: loop body
LE: loop exit
PB: predicated region body
PF: predicated region fallthrough
CT: control target
= control target key end

     0   :  { %9 = vsyncpa [#allocation3], 0  ;;  %s1099_s0 = inlined_call_operand.hbm [shape: f32[16,32], index: 0, kind: input, shape index: {}]   ;;  %s1100_s1 = inlined_call_operand.hbm [shape: f32[30,128], index: 1, kind: input, shape index: {}]   ;;  %s1101_s2 = inlined_call_operand.hbm [shape: bf16[2,32,128], index: 2, kind: input, shape index: {}]   ;;  %s1102_s3 = inlined_call_operand.hbm [shape: bf16[2,128,128], index: 3, kind: input, shape index: {}]   ;;  %s1103_s4 = inlined_call_operand.vmem [shape: f32[16,128], index: 4, kind: output, shape index: {}]  }
   0x1   :  { %10 = vsyncpa [#allocation5], 0 }
   0x2   :  { %11 = vsyncpa [#allocation8], 0  ;;  %s938_s15 = smov [#allocation4]   ;;  %s939_s17 = smov [#allocation2]  }
   0x3   :  { %s29_s16 = sshll.u32 %s938_s15, 4  ;;  %s17_s18 = sshll.u32 %s939_s17, 4  ;;  %s30_s16 = int_to_ptr.vmem [resolvable:$true] %s29_s16  ;;  %s973_s18 = int_to_ptr.vmem [resolvable:$true] %s17_s18 }
   0x4   :  { %s844_s21 = scalar_lea.hbm %s1100_s1, 512 }
   0x5   :  { %p845_p0 = scmp.ne.s32.totalorder %s1100_s1, %s844_s21  ;;  %p848_p1 = scmp.lt.u32.totalorder %s844_s21, %s1100_s1 }
   0x7   :  { %p850_p2 = pnand %p848_p1, %p845_p0 }
   0x9   :  { %853 = shalt.err (!%p850_p2)
}
   0xa   :  { %s854_s26 = scalar_lea.vmem %s30_s16, 512  ;;  %p859_p4 = scmp.lt.s32.totalorder %s30_s16, %s30_s16 }
   0xb   :  { %p855_p3 = scmp.ne.s32.totalorder %s30_s16, %s854_s26  ;;  %p860_p5 = scmp.lt.s32.totalorder %s854_s26, %s854_s26 }
   0xd   :  { %p861_p6 = por %p860_p5, %p859_p4 }
   0xf   :  { %p862_p7 = pnand %p861_p6, %p855_p3 }
  0x11   :  { %865 = shalt.err (!%p862_p7)
}
  0x12   :  { %s940_s27 = smov 128   ;;  %s941_s28 = smov 8  }
  0x13   :  { %35 = dma.hbm_to_vmem [thread:$0]  %s1100_s1, 512, %s30_s16, [#allocation5], %s940_s27, %s940_s27, %s941_s28  }
  0x14   :  { %s866_s7 = scalar_lea.hbm %s1099_s0, 256 }
  0x15   :  { %p867_p8 = scmp.ne.s32.totalorder %s1099_s0, %s866_s7  ;;  %p870_p9 = scmp.lt.u32.totalorder %s866_s7, %s1099_s0 }
  0x17   :  { %p872_p10 = pnand %p870_p9, %p867_p8 }
  0x19   :  { %875 = shalt.err (!%p872_p10)
}
  0x1a   :  { %s876_s12 = scalar_lea.vmem %s973_s18, 256  ;;  %p881_p12 = scmp.lt.s32.totalorder %s973_s18, %s973_s18 }
  0x1b   :  { %p877_p11 = scmp.ne.s32.totalorder %s973_s18, %s876_s12  ;;  %p882_p13 = scmp.lt.s32.totalorder %s876_s12, %s876_s12 }
  0x1d   :  { %p883_p0 = por %p882_p13, %p881_p12 }
  0x1f   :  { %p884_p1 = pnand %p883_p0, %p877_p11 }
  0x21   :  { %887 = shalt.err (!%p884_p1)
}
  0x22   :  { %23 = dma.hbm_to_vmem [thread:$0]  %s1099_s0, 256, %s973_s18, [#allocation3], %s940_s27, %s940_s27, %s941_s28  }
  0x23   :  { %s942_s14 = smov [#allocation6]   ;;  %s888_s19 = scalar_lea.hbm %s1101_s2, 512 }
  0x24   :  { %s41_s15 = sshll.u32 %s942_s14, 4  ;;  %p889_p2 = scmp.ne.s32.totalorder %s1101_s2, %s888_s19  ;;  %s42_s15 = int_to_ptr.vmem [resolvable:$true] %s41_s15 }
  0x25   :  { %p892_p3 = scmp.lt.u32.totalorder %s888_s19, %s1101_s2 }
  0x27   :  { %p894_p4 = pnand %p892_p3, %p889_p2 }
  0x29   :  { %897 = shalt.err (!%p894_p4)
}
  0x2a   :  { %s898_s24 = scalar_lea.vmem %s42_s15, 512  ;;  %p903_p6 = scmp.lt.s32.totalorder %s42_s15, %s42_s15 }
  0x2b   :  { %p899_p5 = scmp.ne.s32.totalorder %s42_s15, %s898_s24  ;;  %p904_p7 = scmp.lt.s32.totalorder %s898_s24, %s898_s24 }
  0x2d   :  { %p905_p8 = por %p904_p7, %p903_p6 }
  0x2f   :  { %p906_p9 = pnand %p905_p8, %p899_p5 }
  0x31   :  { %909 = shalt.err (!%p906_p9)
}
  0x32   :  { %s943_s0 = smov 64   ;;  %s944_s18 = smov 4  }
  0x33   :  { %47 = dma.hbm_to_vmem [thread:$0]  %s1101_s2, 512, %s42_s15, [#allocation5], %s943_s0, %s943_s0, %s944_s18  }
  0x34   :  { %s945_s27 = smov [#allocation7]   ;;  %s910_s5 = scalar_lea.hbm %s1102_s3, 2048 }
  0x35   :  { %s53_s28 = sshll.u32 %s945_s27, 4  ;;  %p911_p10 = scmp.ne.s32.totalorder %s1102_s3, %s910_s5  ;;  %s54_s28 = int_to_ptr.vmem [resolvable:$true] %s53_s28 }
  0x36   :  { %p914_p11 = scmp.lt.u32.totalorder %s910_s5, %s1102_s3 }
  0x38   :  { %p916_p12 = pnand %p914_p11, %p911_p10 }
  0x3a   :  { %919 = shalt.err (!%p916_p12)
}
  0x3b   :  { %s920_s10 = scalar_lea.vmem %s54_s28, 2048  ;;  %p925_p0 = scmp.lt.s32.totalorder %s54_s28, %s54_s28 }
  0x3c   :  { %p921_p13 = scmp.ne.s32.totalorder %s54_s28, %s920_s10  ;;  %p926_p1 = scmp.lt.s32.totalorder %s920_s10, %s920_s10 }
  0x3e   :  { %p927_p2 = por %p926_p1, %p925_p0 }
  0x40   :  { %p928_p3 = pnand %p927_p2, %p921_p13 }
  0x42   :  { %931 = shalt.err (!%p928_p3)
}
  0x43   :  { %59 = dma.hbm_to_vmem [thread:$0]  %s1102_s3, 2048, %s54_s28, [#allocation8], %s943_s0, %s943_s0, %s944_s18  }
  0x44   :  { %932 = dma.done.wait [#allocation3], 256  }
  0x45   :  { %933 = vsyncadd [#allocation3], 4294967040 }
  0x46   :  { %934 = dma.done.wait [#allocation5], 1024  }
  0x47   :  { %935 = vsyncadd [#allocation5], 4294966272 }
  0x48   :  { %936 = dma.done.wait [#allocation8], 2048  }
  0x49   :  { %937 = vsyncadd [#allocation8], 4294965248  ;;  %vm80_vm0 = vcmask 261120   ;;  %v78_v0 = vld [vmem:[#allocation2] sm:$0xff]  ;;  %v83_v1 = vld [vmem:[#allocation4] sm:$0xff]  ;;  %v946_v7 = vmov 0.0   ;;  %v73_v8 = vlaneseq }
  0x4a   :  { %v79_v2 = vld [vmem:[#allocation2 + $0x8] sm:$0xff]  ;;  %v81_v3 = vsel %vm80_vm0, %v78_v0, 0.0  ;;  %730 = vmatprep.subr.bf16.mxu1 %v946_v7  ;;  %758 = vmatprep.subr.bf16.mxu0 %v946_v7  ;;  %v670_v28 = vld [vmem:[#allocation4 + $0x10] ss:$0 sm:$0xff]  ;;  %v671_v30 = vld [vmem:[#allocation4 + $0x11] ss:$0 sm:$0xff] }
  0x4b   :  { %v82_v4 = vsel %vm80_vm0, %v79_v2, 0.0  ;;  %v84_v5 = vadd.f32 %v83_v1, %v81_v3  ;;  %v74_v9 = vand.u32 127, %v73_v8  ;;  %v796_v49 = vld [vmem:[#allocation6] sm:$0xff]   ;;  %v797_v50 = vld [vmem:[#allocation6 + $0x8] sm:$0xff]   ;;  %vm947_vm2 = vmmov 0   ;;  %v801_v8 = vld [vmem:[#allocation7 + $0x18] sm:$0xff]  }
  0x4c   :  { %v85_v6 = vadd.f32 %v83_v1, %v82_v4  ;;  %731 = vmatpush3.bf16.msra.mxu1 %v796_v49  ;;  %734 = vmatprep.mubr.msk.bf16.mxu1 %vm947_vm2, %v946_v7  ;;  %v672_v59 = vld [vmem:[#allocation4 + $0x12] ss:$0 sm:$0xff]  ;;  %v673_v63 = vld [vmem:[#allocation4 + $0x13] ss:$0 sm:$0xff]  ;;  %v798_v3 = vld [vmem:[#allocation7] sm:$0xff]  }
  0x4d   :  { %92 = vadd.xlane.f32.xlu0 %v84_v5  ;;  %vm75_vm1 = vcmp.lt.s32.totalorder %v74_v9, 32  ;;  %732 = vmatprep.subr.bf16.mxu1 %v946_v7  ;;  %v802_v9 = vld [vmem:[#allocation7 + $0x20] sm:$0xff]  }
  0x4e   :  { %v1033_v12 = vsel %vm75_vm1, 1.0, %v946_v7  ;;  %762 = vmatprep.mubr.msk.bf16.mxu0 %vm947_vm2, %v946_v7 }
  0x50   :  { %733 = vmatpush3.bf16.msra.mxu1 %v797_v50 }
  0x51   :  { %94 = vadd.xlane.f32.xlu0 %v85_v6  ;;  %738 = vmatprep.subr.bf16.mxu1 %v946_v7 }
  0xda   :  { %v93_v10 = vpop.xlane.xlu0 %92 }
  0xdb   :  { %v96_v11 = vmul.f32 0.03125, %v93_v10  ;;  %v803_v10 = vld [vmem:[#allocation7 + $0x28] sm:$0xff]  }
  0xdd   :  { %v98_v13 = vsub.f32 %v84_v5, %v96_v11  ;;  %v804_v11 = vld [vmem:[#allocation7 + $0x30] sm:$0xff]  }
  0xde   :  { %v95_v14 = vpop.xlane.xlu0 %94 }
  0xdf   :  { %v97_v15 = vmul.f32 0.03125, %v95_v14  ;;  %v100_v16 = vmul.f32 %v1033_v12, %v98_v13  ;;  %v805_v13 = vld [vmem:[#allocation7 + $0x38] sm:$0xff]   ;;  %v674_v14 = vld [vmem:[#allocation4 + $0x14] ss:$0 sm:$0xff] }
  0xe1   :  { %v99_v17 = vsub.f32 %v85_v6, %v97_v15  ;;  %v102_v18 = vmul.f32 %v100_v16, %v100_v16 }
  0xe3   :  { %104 = vadd.xlane.f32.xlu1 %v102_v18  ;;  %v101_v19 = vmul.f32 %v1033_v12, %v99_v17 }
  0xe5   :  { %v103_v20 = vmul.f32 %v101_v19, %v101_v19 }
  0xe7   :  { %106 = vadd.xlane.f32.xlu1 %v103_v20 }
 0x170   :  { %v105_v21 = vpop.xlane.xlu1 %104 }
 0x171   :  { %v108_v22 = vmul.f32 0.03125, %v105_v21 }
 0x173   :  { %v110_v23 = vadd.f32 1e-05, %v108_v22 }
 0x174   :  { %v107_v24 = vpop.xlane.xlu1 %106 }
 0x175   :  { %816 = vrsqrt.f32 %v110_v23  ;;  %v109_v25 = vmul.f32 0.03125, %v107_v24 }
 0x177   :  { %v111_v26 = vadd.f32 1e-05, %v109_v25 }
 0x179   :  { %818 = vrsqrt.f32 %v111_v26 }
 0x17f   :  { %v817_v27 = vpop.eup %816 }
 0x180   :  { %v114_v29 = vmul.f32 %v817_v27, %v100_v16 }
 0x182   :  { %v120_v31 = vmul.f32 %v670_v28, %v114_v29 }
 0x183   :  { %v819_v32 = vpop.eup %818 }
 0x184   :  { %v126_v33 = vadd.f32 %v671_v30, %v120_v31  ;;  %v115_v34 = vmul.f32 %v819_v32, %v101_v19  ;;  %v678_v32 = vld [vmem:[#allocation4 + $0x15] ss:$0 sm:$0xff] }
 0x186   :  { %v1037_v35 = vadd.f32 %v126_v33, %v84_v5  ;;  %v121_v36 = vmul.f32 %v670_v28, %v115_v34  ;;  %v799_v5 = vld [vmem:[#allocation7 + $0x8] sm:$0xff]  }
 0x188   :  { %130 = vadd.xlane.f32.xlu0 %v1037_v35  ;;  %v127_v37 = vadd.f32 %v671_v30, %v121_v36 }
 0x18a   :  { %v1040_v38 = vadd.f32 %v127_v37, %v85_v6  ;;  %v800_v6 = vld [vmem:[#allocation7 + $0x10] sm:$0xff]  }
 0x18c   :  { %132 = vadd.xlane.f32.xlu1 %v1040_v38 }
 0x215   :  { %v131_v39 = vpop.xlane.xlu0 %130 }
 0x216   :  { %v134_v40 = vmul.f32 0.03125, %v131_v39 }
 0x218   :  { %v136_v41 = vsub.f32 %v1037_v35, %v134_v40 }
 0x219   :  { %v133_v42 = vpop.xlane.xlu1 %132 }
 0x21a   :  { %v135_v43 = vmul.f32 0.03125, %v133_v42  ;;  %v138_v44 = vmul.f32 %v1033_v12, %v136_v41 }
 0x21c   :  { %v137_v45 = vsub.f32 %v1040_v38, %v135_v43  ;;  %v140_v46 = vmul.f32 %v138_v44, %v138_v44 }
 0x21e   :  { %142 = vadd.xlane.f32.xlu0 %v140_v46  ;;  %v139_v47 = vmul.f32 %v1033_v12, %v137_v45 }
 0x220   :  { %v141_v48 = vmul.f32 %v139_v47, %v139_v47 }
 0x222   :  { %144 = vadd.xlane.f32.xlu1 %v141_v48 }
 0x2ab   :  { %v143_v51 = vpop.xlane.xlu0 %142 }
 0x2ac   :  { %v146_v52 = vmul.f32 0.03125, %v143_v51 }
 0x2ae   :  { %v148_v53 = vadd.f32 1e-05, %v146_v52 }
 0x2af   :  { %v145_v54 = vpop.xlane.xlu1 %144 }
 0x2b0   :  { %820 = vrsqrt.f32 %v148_v53  ;;  %v147_v55 = vmul.f32 0.03125, %v145_v54 }
 0x2b2   :  { %v149_v56 = vadd.f32 1e-05, %v147_v55 }
 0x2b4   :  { %822 = vrsqrt.f32 %v149_v56 }
 0x2ba   :  { %v821_v57 = vpop.eup %820 }
 0x2bb   :  { %v152_v58 = vmul.f32 %v821_v57, %v138_v44 }
 0x2bd   :  { %v158_v62 = vmul.f32 %v672_v59, %v152_v58  ;;  %v687_v58 = vld [vmem:[#allocation4 + $0x16] ss:$0 sm:$0xff] }
 0x2be   :  { %v823_v60 = vpop.eup %822 }
 0x2bf   :  { %v153_v61 = vmul.f32 %v823_v60, %v139_v47  ;;  %v164_v1 = vadd.f32 %v673_v63, %v158_v62 }
 0x2c1   :  { %v159_v0 = vmul.f32 %v672_v59, %v153_v61  ;;  %v688_v61 = vld [vmem:[#allocation4 + $0x17] ss:$0 sm:$0xff] }
 0x2c3   :  { %v165_v2 = vadd.f32 %v673_v63, %v159_v0 }
 0x2c5   :  { %v166_v4 = vpack.c.bf16 %v165_v2, %v164_v1 }
 0x2c7   :  { %735 = vmatmul.mubr.msk.bf16.vlgmr.msra.gmra.mrb[0].mxu1 %vm80_vm0, %v166_v4 }
 0x2c8   :  { %739 = vmatpush3.bf16.msra.mxu1 %v798_v3  ;;  %754 = vmatprep.mubr.msk.bf16.mxu1 %vm947_vm2, %v946_v7 }
 0x2c9   :  { %740 = vmatprep.subr.bf16.mxu1 %v946_v7 }
 0x2cc   :  { %741 = vmatpush3.bf16.msra.mxu1 %v799_v5 }
 0x2cd   :  { %742 = vmatprep.subr.bf16.mxu1 %v946_v7 }
 0x2d0   :  { %743 = vmatpush3.bf16.msra.mxu1 %v800_v6 }
 0x2d1   :  { %744 = vmatprep.subr.bf16.mxu1 %v946_v7 }
 0x2d4   :  { %745 = vmatpush3.bf16.msra.mxu1 %v801_v8 }
 0x2d5   :  { %746 = vmatprep.subr.bf16.mxu1 %v946_v7 }
 0x2d8   :  { %747 = vmatpush3.bf16.msra.mxu1 %v802_v9 }
 0x2d9   :  { %748 = vmatprep.subr.bf16.mxu1 %v946_v7 }
 0x2dc   :  { %749 = vmatpush3.bf16.msra.mxu1 %v803_v10 }
 0x2dd   :  { %750 = vmatprep.subr.bf16.mxu1 %v946_v7 }
 0x2e0   :  { %751 = vmatpush3.bf16.msra.mxu1 %v804_v11 }
 0x2e1   :  { %752 = vmatprep.subr.bf16.mxu1 %v946_v7 }
 0x2e4   :  { %753 = vmatpush3.bf16.msra.mxu1 %v805_v13 }
 0x39a   :  { %v224_v15 = vpop.f32.mrb[0].mxu1 }
 0x39b   :  { %v225_v16 = vadd.f32 %v674_v14, %v224_v15  ;;  %v736_v17 = vpop.f32.mrb[1].mxu1 }
 0x39c   :  { %v227_v18 = vpop.f32.mrb[2].mxu1  ;;  %v806_v17 = vld [vmem:[#allocation6 + $0x10] sm:$0xff]  }
 0x39d   :  { %v233_v19 = vmul.f32 0.70710677, %v225_v16  ;;  %v228_v20 = vadd.f32 %v674_v14, %v227_v18  ;;  %v737_v21 = vpop.f32.mrb[3].mxu1  ;;  %v231_v26 = vmul.f32 0.5, %v225_v16  ;;  %759 = vmatpush3.bf16.msra.mxu0 %v806_v17  ;;  %v807_v18 = vld [vmem:[#allocation6 + $0x18] sm:$0xff]  }
 0x39e   :  { %760 = vmatprep.subr.bf16.mxu0 %v946_v7 }
 0x39f   :  { %824 = verf.f32 %v233_v19  ;;  %v234_v22 = vmul.f32 0.70710677, %v228_v20  ;;  %v232_v27 = vmul.f32 0.5, %v228_v20 }
 0x3a1   :  { %826 = verf.f32 %v234_v22  ;;  %761 = vmatpush3.bf16.msra.mxu0 %v807_v18 }
 0x3a2   :  { %766 = vmatprep.subr.bf16.mxu0 %v946_v7 }
 0x3a9   :  { %v825_v23 = vpop.eup %824 }
 0x3aa   :  { %v237_v24 = vadd.f32 1.0, %v825_v23 }
 0x3ab   :  { %v827_v25 = vpop.eup %826 }
 0x3ac   :  { %v238_v28 = vadd.f32 1.0, %v827_v25  ;;  %v239_v29 = vmul.f32 %v237_v24, %v231_v26  ;;  %v689_v26 = vld [vmem:[#allocation4 + $0x18] ss:$0 sm:$0xff] }
 0x3ae   :  { %v240_v30 = vmul.f32 %v238_v28, %v232_v27 }
 0x3b0   :  { %v241_v31 = vpack.c.bf16 %v240_v30, %v239_v29 }
 0x3b2   :  { %755 = vmatmul.mubr.bf16.vlgmr.msra.gmra.mrb[4].mxu1 %v241_v31  ;;  %v690_v31 = vld [vmem:[#allocation4 + $0x19] ss:$0 sm:$0xff] }
 0x485   :  { %v344_v33 = vpop.f32.mrb[4].mxu1 }
 0x486   :  { %v345_v34 = vadd.f32 %v678_v32, %v344_v33  ;;  %v756_v36 = vpop.f32.mrb[5].mxu1 }
 0x487   :  { %v347_v37 = vpop.f32.mrb[6].mxu1  ;;  %v808_v36 = vld [vmem:[#allocation7 + $0x40] sm:$0xff]  }
 0x488   :  { %v351_v39 = vadd.f32 %v345_v34, %v1037_v35  ;;  %v348_v40 = vadd.f32 %v678_v32, %v347_v37  ;;  %v757_v41 = vpop.f32.mrb[7].mxu1 }
 0x489   :  { %v811_v41 = vld [vmem:[#allocation7 + $0x58] sm:$0xff]  }
 0x48a   :  { %v352_v42 = vadd.f32 %v348_v40, %v1040_v38  ;;  %359 = vadd.xlane.f32.xlu0 %v351_v39  ;;  %v810_v40 = vld [vmem:[#allocation7 + $0x50] sm:$0xff]  }
 0x48c   :  { %361 = vadd.xlane.f32.xlu1 %v352_v42 }
 0x517   :  { %v360_v43 = vpop.xlane.xlu0 %359 }
 0x518   :  { %v363_v44 = vmul.f32 0.03125, %v360_v43  ;;  %v813_v43 = vld [vmem:[#allocation7 + $0x68] sm:$0xff]  }
 0x519   :  { %v362_v45 = vpop.xlane.xlu1 %361 }
 0x51a   :  { %v365_v46 = vsub.f32 %v351_v39, %v363_v44  ;;  %v364_v47 = vmul.f32 0.03125, %v362_v45  ;;  %v814_v44 = vld [vmem:[#allocation7 + $0x70] sm:$0xff]   ;;  %v815_v45 = vld [vmem:[#allocation7 + $0x78] sm:$0xff]  }
 0x51c   :  { %v366_v48 = vsub.f32 %v352_v42, %v364_v47  ;;  %v367_v49 = vmul.f32 %v1033_v12, %v365_v46  ;;  %v691_v46 = vld [vmem:[#allocation4 + $0x1a] ss:$0 sm:$0xff] }
 0x51e   :  { %v369_v50 = vmul.f32 %v367_v49, %v367_v49  ;;  %v368_v51 = vmul.f32 %v1033_v12, %v366_v48 }
 0x520   :  { %371 = vadd.xlane.f32.xlu0 %v369_v50  ;;  %v370_v52 = vmul.f32 %v368_v51, %v368_v51 }
 0x522   :  { %373 = vadd.xlane.f32.xlu1 %v370_v52 }
 0x5ad   :  { %v372_v35 = vpop.xlane.xlu0 %371 }
 0x5ae   :  { %v375_v53 = vmul.f32 0.03125, %v372_v35 }
 0x5af   :  { %v374_v54 = vpop.xlane.xlu1 %373 }
 0x5b0   :  { %v377_v38 = vadd.f32 1e-05, %v375_v53  ;;  %v376_v55 = vmul.f32 0.03125, %v374_v54 }
 0x5b2   :  { %828 = vrsqrt.f32 %v377_v38  ;;  %v378_v56 = vadd.f32 1e-05, %v376_v55 }
 0x5b4   :  { %830 = vrsqrt.f32 %v378_v56 }
 0x5bc   :  { %v829_v57 = vpop.eup %828 }
 0x5bd   :  { %v381_v59 = vmul.f32 %v829_v57, %v367_v49 }
 0x5be   :  { %v831_v60 = vpop.eup %830 }
 0x5bf   :  { %v387_v62 = vmul.f32 %v687_v58, %v381_v59  ;;  %v382_v63 = vmul.f32 %v831_v60, %v368_v51 }
 0x5c1   :  { %v393_v0 = vadd.f32 %v688_v61, %v387_v62  ;;  %v388_v1 = vmul.f32 %v687_v58, %v382_v63 }
 0x5c3   :  { %v1067_v2 = vadd.f32 %v393_v0, %v351_v39  ;;  %v394_v3 = vadd.f32 %v688_v61, %v388_v1  ;;  %v809_v39 = vld [vmem:[#allocation7 + $0x48] sm:$0xff]   ;;  %v695_v61 = vld [vmem:[#allocation4 + $0x1b] ss:$0 sm:$0xff] }
 0x5c5   :  { %397 = vadd.xlane.f32.xlu0 %v1067_v2  ;;  %v1070_v4 = vadd.f32 %v394_v3, %v352_v42  ;;  %v812_v42 = vld [vmem:[#allocation7 + $0x60] sm:$0xff]  }
 0x5c7   :  { %399 = vadd.xlane.f32.xlu1 %v1070_v4 }
 0x652   :  { %v398_v5 = vpop.xlane.xlu0 %397 }
 0x653   :  { %v401_v6 = vmul.f32 0.03125, %v398_v5 }
 0x654   :  { %v400_v8 = vpop.xlane.xlu1 %399 }
 0x655   :  { %v403_v9 = vsub.f32 %v1067_v2, %v401_v6  ;;  %v402_v10 = vmul.f32 0.03125, %v400_v8 }
 0x657   :  { %v404_v11 = vsub.f32 %v1070_v4, %v402_v10  ;;  %v405_v13 = vmul.f32 %v1033_v12, %v403_v9 }
 0x659   :  { %v407_v14 = vmul.f32 %v405_v13, %v405_v13  ;;  %v406_v15 = vmul.f32 %v1033_v12, %v404_v11 }
 0x65b   :  { %409 = vadd.xlane.f32.xlu0 %v407_v14  ;;  %v408_v16 = vmul.f32 %v406_v15, %v406_v15 }
 0x65d   :  { %411 = vadd.xlane.f32.xlu1 %v408_v16 }
 0x6e8   :  { %v410_v19 = vpop.xlane.xlu0 %409 }
 0x6e9   :  { %v413_v20 = vmul.f32 0.03125, %v410_v19 }
 0x6ea   :  { %v412_v21 = vpop.xlane.xlu1 %411 }
 0x6eb   :  { %v415_v22 = vadd.f32 1e-05, %v413_v20  ;;  %v414_v23 = vmul.f32 0.03125, %v412_v21 }
 0x6ed   :  { %832 = vrsqrt.f32 %v415_v22  ;;  %v416_v24 = vadd.f32 1e-05, %v414_v23 }
 0x6ef   :  { %834 = vrsqrt.f32 %v416_v24 }
 0x6f7   :  { %v833_v25 = vpop.eup %832 }
 0x6f8   :  { %v419_v27 = vmul.f32 %v833_v25, %v405_v13  ;;  %v704_v25 = vld [vmem:[#allocation4 + $0x1c] ss:$0 sm:$0xff] }
 0x6f9   :  { %v835_v28 = vpop.eup %834 }
 0x6fa   :  { %v420_v29 = vmul.f32 %v835_v28, %v406_v15  ;;  %v425_v30 = vmul.f32 %v689_v26, %v419_v27  ;;  %v705_v28 = vld [vmem:[#allocation4 + $0x1d] ss:$0 sm:$0xff] }
 0x6fc   :  { %v426_v32 = vmul.f32 %v689_v26, %v420_v29  ;;  %v431_v33 = vadd.f32 %v690_v31, %v425_v30 }
 0x6fe   :  { %v432_v34 = vadd.f32 %v690_v31, %v426_v32 }
 0x700   :  { %v433_v37 = vpack.c.bf16 %v432_v34, %v431_v33 }
 0x702   :  { %763 = vmatmul.mubr.msk.bf16.vlgmr.msra.gmra.mrb[0].mxu0 %vm80_vm0, %v433_v37 }
 0x703   :  { %767 = vmatpush3.bf16.msra.mxu0 %v808_v36  ;;  %782 = vmatprep.mubr.msk.bf16.mxu0 %vm947_vm2, %v946_v7 }
 0x704   :  { %768 = vmatprep.subr.bf16.mxu0 %v946_v7 }
 0x707   :  { %769 = vmatpush3.bf16.msra.mxu0 %v809_v39 }
 0x708   :  { %770 = vmatprep.subr.bf16.mxu0 %v946_v7 }
 0x70b   :  { %771 = vmatpush3.bf16.msra.mxu0 %v810_v40 }
 0x70c   :  { %772 = vmatprep.subr.bf16.mxu0 %v946_v7 }
 0x70f   :  { %773 = vmatpush3.bf16.msra.mxu0 %v811_v41 }
 0x710   :  { %774 = vmatprep.subr.bf16.mxu0 %v946_v7 }
 0x713   :  { %775 = vmatpush3.bf16.msra.mxu0 %v812_v42 }
 0x714   :  { %776 = vmatprep.subr.bf16.mxu0 %v946_v7 }
 0x717   :  { %777 = vmatpush3.bf16.msra.mxu0 %v813_v43 }
 0x718   :  { %778 = vmatprep.subr.bf16.mxu0 %v946_v7 }
 0x71b   :  { %779 = vmatpush3.bf16.msra.mxu0 %v814_v44 }
 0x71c   :  { %780 = vmatprep.subr.bf16.mxu0 %v946_v7 }
 0x71f   :  { %781 = vmatpush3.bf16.msra.mxu0 %v815_v45 }
 0x7d5   :  { %v492_v47 = vpop.f32.mrb[0].mxu0 }
 0x7d6   :  { %v493_v48 = vadd.f32 %v691_v46, %v492_v47  ;;  %v764_v49 = vpop.f32.mrb[1].mxu0 }
 0x7d7   :  { %v495_v50 = vpop.f32.mrb[2].mxu0 }
 0x7d8   :  { %v501_v51 = vmul.f32 0.70710677, %v493_v48  ;;  %v496_v52 = vadd.f32 %v691_v46, %v495_v50  ;;  %v765_v35 = vpop.f32.mrb[3].mxu0  ;;  %v499_v56 = vmul.f32 0.5, %v493_v48 }
 0x7da   :  { %836 = verf.f32 %v501_v51  ;;  %v502_v53 = vmul.f32 0.70710677, %v496_v52  ;;  %v500_v57 = vmul.f32 0.5, %v496_v52 }
 0x7dc   :  { %838 = verf.f32 %v502_v53 }
 0x7e4   :  { %v837_v54 = vpop.eup %836 }
 0x7e5   :  { %v505_v38 = vadd.f32 1.0, %v837_v54 }
 0x7e6   :  { %v839_v55 = vpop.eup %838 }
 0x7e7   :  { %v506_v58 = vadd.f32 1.0, %v839_v55  ;;  %v507_v7 = vmul.f32 %v505_v38, %v499_v56 }
 0x7e9   :  { %v508_v59 = vmul.f32 %v506_v58, %v500_v57 }
 0x7eb   :  { %v509_v60 = vpack.c.bf16 %v508_v59, %v507_v7 }
 0x7ed   :  { %783 = vmatmul.mubr.bf16.vlgmr.msra.gmra.mrb[4].mxu0 %v509_v60 }
 0x8c0   :  { %v613_v62 = vpop.f32.mrb[4].mxu0 }
 0x8c1   :  { %v614_v63 = vadd.f32 %v695_v61, %v613_v62  ;;  %v784_v0 = vpop.f32.mrb[5].mxu0 }
 0x8c2   :  { %v616_v1 = vpop.f32.mrb[6].mxu0 }
 0x8c3   :  { %v617_v3 = vadd.f32 %v695_v61, %v616_v1  ;;  %v785_v5 = vpop.f32.mrb[7].mxu0  ;;  %v620_v6 = vadd.f32 %v614_v63, %v1067_v2 }
 0x8c5   :  { %624 = vadd.xlane.f32.xlu0 %v620_v6  ;;  %v621_v8 = vadd.f32 %v617_v3, %v1070_v4 }
 0x8c7   :  { %626 = vadd.xlane.f32.xlu1 %v621_v8 }
 0x952   :  { %v625_v9 = vpop.xlane.xlu0 %624 }
 0x953   :  { %v628_v10 = vmul.f32 0.03125, %v625_v9 }
 0x954   :  { %v627_v11 = vpop.xlane.xlu1 %626 }
 0x955   :  { %v630_v13 = vsub.f32 %v620_v6, %v628_v10  ;;  %v629_v14 = vmul.f32 0.03125, %v627_v11 }
 0x957   :  { %v631_v15 = vsub.f32 %v621_v8, %v629_v14  ;;  %v632_v16 = vmul.f32 %v1033_v12, %v630_v13 }
 0x959   :  { %v634_v17 = vmul.f32 %v632_v16, %v632_v16  ;;  %v633_v18 = vmul.f32 %v1033_v12, %v631_v15 }
 0x95b   :  { %636 = vadd.xlane.f32.xlu0 %v634_v17  ;;  %v635_v19 = vmul.f32 %v633_v18, %v633_v18 }
 0x95d   :  { %638 = vadd.xlane.f32.xlu1 %v635_v19 }
 0x9e8   :  { %v637_v20 = vpop.xlane.xlu0 %636 }
 0x9e9   :  { %v640_v2 = vmul.f32 0.03125, %v637_v20 }
 0x9ea   :  { %v639_v21 = vpop.xlane.xlu1 %638 }
 0x9eb   :  { %v642_v22 = vadd.f32 1e-05, %v640_v2  ;;  %v641_v4 = vmul.f32 0.03125, %v639_v21 }
 0x9ed   :  { %840 = vrsqrt.f32 %v642_v22  ;;  %v643_v23 = vadd.f32 1e-05, %v641_v4 }
 0x9ef   :  { %842 = vrsqrt.f32 %v643_v23 }
 0x9f7   :  { %v841_v24 = vpop.eup %840 }
 0x9f8   :  { %v646_v26 = vmul.f32 %v841_v24, %v632_v16 }
 0x9f9   :  { %v843_v27 = vpop.eup %842 }
 0x9fa   :  { %v652_v29 = vmul.f32 %v704_v25, %v646_v26  ;;  %v647_v30 = vmul.f32 %v843_v27, %v633_v18 }
 0x9fc   :  { %v658_v31 = vadd.f32 %v705_v28, %v652_v29  ;;  %v653_v12 = vmul.f32 %v704_v25, %v647_v30 }
 0x9fe   :  { %660 = vst [vmem:[%s1103_s4] sm:$0xff] %v658_v31  ;;  %v659_v32 = vadd.f32 %v705_v28, %v653_v12 }
 0xa00   :  { %661 = vst [vmem:[%s1103_s4 + $0x8] sm:$0xff] %v659_v32 }
 0xa01   :  { %666 = vsyncpa [#allocation3], 1 }
 0xa02   :  { %667 = vsyncpa [#allocation5], 1 }
 0xa03   :  { %668 = vsyncpa [#allocation8], 1 }

</bundles_post_ra>
